<compile_context>
chip_gen: v6e
topology: v6e:2x2x1
jax: 0.10.0
libtpu: 0.0.40
codegen_flags: <defaults>
</compile_context>

<pallas_src>
import math
import numpy as np
import jax
import jax.numpy as jnp
from jax.experimental import pallas as pl
from jax.experimental.pallas import tpu as pltpu  # noqa: F401  (TPU backend)

# ------------------------- model hyper-parameters ---------------------------
EMBED_DIM = 32
NUM_HEADS = 4
FWD_DIM   = 64
HEAD_DIM  = EMBED_DIM // NUM_HEADS
BATCH     = 2
SEQ_LEN   = 8
LN_EPS    = 1e-5

# column offsets inside the packed weight slab (rows 0:E hold the E-row matrices)
_C_QKV = 0                      # (E, 3E)   fused, pre-transposed, q pre-scaled
_C_WO  = 3 * EMBED_DIM          # (E, E)    out_proj, pre-transposed
_C_W1  = 4 * EMBED_DIM          # (E, F)    FFN linear-1, pre-transposed
_C_W2  = 4 * EMBED_DIM + FWD_DIM  # (F, E)  FFN linear-2, pre-transposed
_W_COLS = _C_W2 + EMBED_DIM     # 224
_W_ROWS = max(EMBED_DIM, FWD_DIM)  # 64


def _layernorm(x, gamma, beta):
    mean = jnp.mean(x, axis=-1, keepdims=True)
    var = jnp.mean((x - mean) ** 2, axis=-1, keepdims=True)
    return (x - mean) * jax.lax.rsqrt(var + LN_EPS) * gamma + beta


def transformer_layer_kernel(x_ref, w_ref, vec_ref, emb_ref, att_ref):
    E, H, D, F = EMBED_DIM, NUM_HEADS, HEAD_DIM, FWD_DIM
    B, L, _ = att_ref.shape
    N = B * L

    x = x_ref[...]                                            # (N, E)

    # ---- small vectors: static slices of the packed (8,128) slab (free) ----
    bqkv = vec_ref[0:1, 0:3 * E]                              # (1, 3E)
    bo   = vec_ref[1:2, 0:E]
    g1   = vec_ref[2:3, 0:E]
    be1  = vec_ref[3:4, 0:E]
    b1   = vec_ref[4:5, 0:F]
    b2   = vec_ref[5:6, 0:E]
    g2   = vec_ref[6:7, 0:E]
    be2  = vec_ref[7:8, 0:E]

    # ---- fused QKV projection (one MXU matmul; softmax scale pre-folded into q) ----
    qkv = jnp.dot(x, w_ref[0:E, _C_QKV:_C_QKV + 3 * E],
                  preferred_element_type=jnp.float32) + bqkv   # (N, 3E)

    # ---- per-head attention (static unroll; only lane slices + sublane regroups) ----
    ctx_parts = []
    att_acc = jnp.zeros((B, L, L), jnp.float32)
    for h in range(H):
        qh = qkv[:, h * D:(h + 1) * D].reshape(B, L, D)
        kh = qkv[:, E + h * D:E + (h + 1) * D].reshape(B, L, D)
        vh = qkv[:, 2 * E + h * D:2 * E + (h + 1) * D].reshape(B, L, D)

        s = jnp.einsum('bld,bmd->blm', qh, kh, preferred_element_type=jnp.float32)
        s = s - jnp.max(s, axis=-1, keepdims=True)
        p = jnp.exp(s)
        p = p / jnp.sum(p, axis=-1, keepdims=True)            # exact: att is an output
        att_acc = att_acc + p

        ctx_parts.append(
            jnp.einsum('blm,bmd->bld', p, vh,
                       preferred_element_type=jnp.float32).reshape(N, D))

    # single dense output projection instead of 4 partial matmuls
    ctx = jnp.concatenate(ctx_parts, axis=-1)                  # (N, E), head-major lanes
    attn_out = jnp.dot(ctx, w_ref[0:E, _C_WO:_C_WO + E],
                       preferred_element_type=jnp.float32) + bo
    y = _layernorm(attn_out + x, g1, be1)

    # ---- pointwise feed-forward + residual + LayerNorm ----
    h1 = jnp.maximum(
        jnp.dot(y, w_ref[0:E, _C_W1:_C_W1 + F],
                preferred_element_type=jnp.float32) + b1, 0.0)
    f = jnp.dot(h1, w_ref[0:F, _C_W2:_C_W2 + E],
                preferred_element_type=jnp.float32) + b2
    emb_ref[...] = _layernorm(f + y, g2, be2)
    att_ref[...] = att_acc * (1.0 / H)      # nn.MultiheadAttention averages heads


def fuse_params(params):
    """One-time host-side prep: fuse/transposed weights into two lane-dense slabs."""
    (wq, bq, wk, bk, wv, bv, wo, bo, g1, be1, w1, b1, w2, b2, g2, be2) = params
    E, F = EMBED_DIM, FWD_DIM
    scale = 1.0 / math.sqrt(HEAD_DIM)

    wqkv_t = jnp.concatenate([wq * scale, wk, wv], axis=0).T      # (E, 3E)
    w_slab = jnp.zeros((_W_ROWS, _W_COLS), jnp.float32)
    w_slab = w_slab.at[:E, _C_QKV:_C_QKV + 3 * E].set(wqkv_t)
    w_slab = w_slab.at[:E, _C_WO:_C_WO + E].set(wo.T)
    w_slab = w_slab.at[:E, _C_W1:_C_W1 + F].set(w1.T)
    w_slab = w_slab.at[:F, _C_W2:_C_W2 + E].set(w2.T)

    bqkv = jnp.concatenate([bq * scale, bk, bv], axis=-1)

    def row(v):
        v = jnp.reshape(v, (-1,))
        return jnp.pad(v, (0, 128 - v.shape[0]))

    vec_slab = jnp.stack([row(bqkv), row(bo), row(g1), row(be1),
                          row(b1), row(b2), row(g2), row(be2)])   # (8, 128)
    return w_slab, vec_slab


@jax.jit
def transformer_layer(x, w_slab, vec_slab):
    """x: (B, L, E) float32.  Returns (emb (B,L,E), att (B,L,L))."""
    B, L, E = x.shape
    emb2, att = pl.pallas_call(
        transformer_layer_kernel,
        out_shape=(
            jax.ShapeDtypeStruct((B * L, E), jnp.float32),
            jax.ShapeDtypeStruct((B, L, L), jnp.float32),
        ),
        # no grid: single invocation; every operand lives whole in VMEM (<100 KiB)
    )(x.reshape(B * L, E), w_slab, vec_slab)
    return emb2.reshape(B, L, E), att


# ----------------------- deterministic parameter init -----------------------
def init_params(key):
    E, F = EMBED_DIM, FWD_DIM
    ks = jax.random.split(key, 8)
    s = 0.1
    wq = jax.random.normal(ks[0], (E, E), jnp.float32) * s
    wk = jax.random.normal(ks[1], (E, E), jnp.float32) * s
    wv = jax.random.normal(ks[2], (E, E), jnp.float32) * s
    wo = jax.random.normal(ks[3], (E, E), jnp.float32) * s
    bq = jax.random.normal(ks[4], (1, E), jnp.float32) * s
    bk = jnp.zeros((1, E), jnp.float32)
    bv = jax.random.normal(ks[5], (1, E), jnp.float32) * s
    bo = jnp.zeros((1, E), jnp.float32)
    g1, be1 = jnp.ones((1, E), jnp.float32), jnp.zeros((1, E), jnp.float32)
    w1 = jax.random.normal(ks[6], (F, E), jnp.float32) * s
    b1 = jnp.zeros((1, F), jnp.float32)
    w2 = jax.random.normal(ks[7], (E, F), jnp.float32) * s
    b2 = jnp.zeros((1, E), jnp.float32)
    g2, be2 = jnp.ones((1, E), jnp.float32), jnp.zeros((1, E), jnp.float32)
    return (wq, bq, wk, bk, wv, bv, wo, bo, g1, be1, w1, b1, w2, b2, g2, be2)


# ------------------------------ JAX reference --------------------------------
def reference(x, params):
    (wq, bq, wk, bk, wv, bv, wo, bo, g1, be1, w1, b1, w2, b2, g2, be2) = params
    B, L, E = x.shape
    H, D = NUM_HEADS, HEAD_DIM
    q = x @ wq.T + bq
    k = x @ wk.T + bk
    v = x @ wv.T + bv
    qh = q.reshape(B, L, H, D).transpose(0, 2, 1, 3)
    kh = k.reshape(B, L, H, D).transpose(0, 2, 1, 3)
    vh = v.reshape(B, L, H, D).transpose(0, 2, 1, 3)
    s = jnp.einsum("bhqd,bhkd->bhqk", qh, kh) / math.sqrt(D)
    p = jax.nn.softmax(s, axis=-1)
    ctx = jnp.einsum("bhqk,bhkd->bhqd", p, vh).transpose(0, 2, 1, 3).reshape(B, L, E)
    attn_out = ctx @ wo.T + bo
    y = _layernorm(attn_out + x, g1, be1)
    f = jnp.maximum(y @ w1.T + b1, 0.0) @ w2.T + b2
    z = _layernorm(f + y, g2, be2)
    return z, p.mean(axis=1)


if __name__ == "__main__":
    key = jax.random.PRNGKey(0)
    kx, kp = jax.random.split(key)
    x = jax.random.normal(kx, (BATCH, SEQ_LEN, EMBED_DIM), jnp.float32)
    params = init_params(kp)

    # one-time weight fusion (out of the per-call path)
    w_slab, vec_slab = jax.block_until_ready(fuse_params(params))

    emb, att = transformer_layer(x, w_slab, vec_slab)
    jax.block_until_ready((emb, att))

    emb_ref, att_ref = reference(x, params)
    assert np.allclose(np.asarray(emb), np.asarray(emb_ref), atol=1e-3, rtol=1e-3)
    assert np.allclose(np.asarray(att), np.asarray(att_ref), atol=1e-3, rtol=1e-3)

    print("KERNEL_OK")
</pallas_src>

<mosaic_0001>
module attributes {stable_mosaic.version = 11 : i64} {
  func.func @transformer_layer_kernel(%arg0: memref<16x32xf32, #tpu.memory_space<vmem>>, %arg1: memref<64x224xf32, #tpu.memory_space<vmem>>, %arg2: memref<8x128xf32, #tpu.memory_space<vmem>>, %arg3: memref<16x32xf32, #tpu.memory_space<vmem>>, %arg4: memref<2x8x8xf32, #tpu.memory_space<vmem>>) attributes {dimension_semantics = [], scalar_prefetch = 0 : i64, scratch_operands = 0 : i64, tpu.core_type = #tpu.core_type<tc>} {
    %c0 = arith.constant 0 : index
    %c0_0 = arith.constant 0 : index
    %0 = vector.load %arg0[%c0, %c0_0] : memref<16x32xf32, #tpu.memory_space<vmem>>, vector<16x32xf32>
    %c0_1 = arith.constant 0 : index
    %c0_2 = arith.constant 0 : index
    %1 = vector.load %arg2[%c0_1, %c0_2] : memref<8x128xf32, #tpu.memory_space<vmem>>, vector<1x96xf32>
    %c1 = arith.constant 1 : index
    %c0_3 = arith.constant 0 : index
    %2 = vector.load %arg2[%c1, %c0_3] : memref<8x128xf32, #tpu.memory_space<vmem>>, vector<1x32xf32>
    %c2 = arith.constant 2 : index
    %c0_4 = arith.constant 0 : index
    %3 = vector.load %arg2[%c2, %c0_4] : memref<8x128xf32, #tpu.memory_space<vmem>>, vector<1x32xf32>
    %c3 = arith.constant 3 : index
    %c0_5 = arith.constant 0 : index
    %4 = vector.load %arg2[%c3, %c0_5] : memref<8x128xf32, #tpu.memory_space<vmem>>, vector<1x32xf32>
    %c4 = arith.constant 4 : index
    %c0_6 = arith.constant 0 : index
    %5 = vector.load %arg2[%c4, %c0_6] : memref<8x128xf32, #tpu.memory_space<vmem>>, vector<1x64xf32>
    %c5 = arith.constant 5 : index
    %c0_7 = arith.constant 0 : index
    %6 = vector.load %arg2[%c5, %c0_7] : memref<8x128xf32, #tpu.memory_space<vmem>>, vector<1x32xf32>
    %c6 = arith.constant 6 : index
    %c0_8 = arith.constant 0 : index
    %7 = vector.load %arg2[%c6, %c0_8] : memref<8x128xf32, #tpu.memory_space<vmem>>, vector<1x32xf32>
    %c7 = arith.constant 7 : index
    %c0_9 = arith.constant 0 : index
    %8 = vector.load %arg2[%c7, %c0_9] : memref<8x128xf32, #tpu.memory_space<vmem>>, vector<1x32xf32>
    %c0_10 = arith.constant 0 : index
    %c0_11 = arith.constant 0 : index
    %9 = vector.load %arg1[%c0_10, %c0_11] : memref<64x224xf32, #tpu.memory_space<vmem>>, vector<32x96xf32>
    %cst = arith.constant dense<0.000000e+00> : vector<16x96xf32>
    %10 = tpu.matmul %0, %9, %cst {dimension_numbers = #tpu.dot_dimension_numbers<[1], [0], [0], [1], [0, 0, 1, 1], [], []>} : vector<16x32xf32>, vector<32x96xf32>, vector<16x96xf32> -> vector<16x96xf32>
    %11 = vector.broadcast %1 : vector<1x96xf32> to vector<16x96xf32>
    %12 = arith.addf %10, %11 : vector<16x96xf32>
    %cst_12 = arith.constant 0.000000e+00 : f32
    %13 = vector.broadcast %cst_12 : f32 to vector<2x8x8xf32>
    %14 = vector.extract_strided_slice %12 {offsets = [0, 0], sizes = [16, 8], strides = [1, 1]} : vector<16x96xf32> to vector<16x8xf32>
    %15 = vector.shape_cast %14 : vector<16x8xf32> to vector<2x8x8xf32>
    %16 = vector.extract_strided_slice %12 {offsets = [0, 32], sizes = [16, 8], strides = [1, 1]} : vector<16x96xf32> to vector<16x8xf32>
    %17 = vector.shape_cast %16 : vector<16x8xf32> to vector<2x8x8xf32>
    %18 = vector.extract_strided_slice %12 {offsets = [0, 64], sizes = [16, 8], strides = [1, 1]} : vector<16x96xf32> to vector<16x8xf32>
    %19 = vector.shape_cast %18 : vector<16x8xf32> to vector<2x8x8xf32>
    "tpu.trace_start"() <{level = 10 : i32, message = "bld,bmd->blm"}> : () -> ()
    %cst_13 = arith.constant dense<0.000000e+00> : vector<2x8x8xf32>
    %20 = tpu.matmul %15, %17, %cst_13 {dimension_numbers = #tpu.dot_dimension_numbers<[2], [2], [1], [1], [0, 0, 0, 1, 1, 1], [0], [0]>} : vector<2x8x8xf32>, vector<2x8x8xf32>, vector<2x8x8xf32> -> vector<2x8x8xf32>
    "tpu.trace_stop"() : () -> ()
    %cst_14 = arith.constant dense<0xFF800000> : vector<2x8xf32>
    %21 = vector.multi_reduction <maximumf>, %20, %cst_14 [2] : vector<2x8x8xf32> to vector<2x8xf32>
    %22 = vector.shape_cast %21 : vector<2x8xf32> to vector<2x8x1xf32>
    %23 = vector.broadcast %22 : vector<2x8x1xf32> to vector<2x8x8xf32>
    %24 = arith.subf %20, %23 : vector<2x8x8xf32>
    %25 = math.exp %24 : vector<2x8x8xf32>
    %cst_15 = arith.constant dense<0.000000e+00> : vector<2x8xf32>
    %26 = vector.multi_reduction <add>, %25, %cst_15 [2] : vector<2x8x8xf32> to vector<2x8xf32>
    %27 = vector.shape_cast %26 : vector<2x8xf32> to vector<2x8x1xf32>
    %28 = vector.broadcast %27 : vector<2x8x1xf32> to vector<2x8x8xf32>
    %29 = arith.divf %25, %28 : vector<2x8x8xf32>
    %30 = arith.addf %13, %29 : vector<2x8x8xf32>
    "tpu.trace_start"() <{level = 10 : i32, message = "blm,bmd->bld"}> : () -> ()
    %cst_16 = arith.constant dense<0.000000e+00> : vector<2x8x8xf32>
    %31 = tpu.matmul %29, %19, %cst_16 {dimension_numbers = #tpu.dot_dimension_numbers<[2], [1], [1], [2], [0, 0, 0, 1, 1, 2], [0], [0]>} : vector<2x8x8xf32>, vector<2x8x8xf32>, vector<2x8x8xf32> -> vector<2x8x8xf32>
    "tpu.trace_stop"() : () -> ()
    %32 = vector.shape_cast %31 : vector<2x8x8xf32> to vector<16x8xf32>
    %33 = vector.extract_strided_slice %12 {offsets = [0, 8], sizes = [16, 8], strides = [1, 1]} : vector<16x96xf32> to vector<16x8xf32>
    %34 = vector.shape_cast %33 : vector<16x8xf32> to vector<2x8x8xf32>
    %35 = vector.extract_strided_slice %12 {offsets = [0, 40], sizes = [16, 8], strides = [1, 1]} : vector<16x96xf32> to vector<16x8xf32>
    %36 = vector.shape_cast %35 : vector<16x8xf32> to vector<2x8x8xf32>
    %37 = vector.extract_strided_slice %12 {offsets = [0, 72], sizes = [16, 8], strides = [1, 1]} : vector<16x96xf32> to vector<16x8xf32>
    %38 = vector.shape_cast %37 : vector<16x8xf32> to vector<2x8x8xf32>
    "tpu.trace_start"() <{level = 10 : i32, message = "bld,bmd->blm"}> : () -> ()
    %cst_17 = arith.constant dense<0.000000e+00> : vector<2x8x8xf32>
    %39 = tpu.matmul %34, %36, %cst_17 {dimension_numbers = #tpu.dot_dimension_numbers<[2], [2], [1], [1], [0, 0, 0, 1, 1, 1], [0], [0]>} : vector<2x8x8xf32>, vector<2x8x8xf32>, vector<2x8x8xf32> -> vector<2x8x8xf32>
    "tpu.trace_stop"() : () -> ()
    %cst_18 = arith.constant dense<0xFF800000> : vector<2x8xf32>
    %40 = vector.multi_reduction <maximumf>, %39, %cst_18 [2] : vector<2x8x8xf32> to vector<2x8xf32>
    %41 = vector.shape_cast %40 : vector<2x8xf32> to vector<2x8x1xf32>
    %42 = vector.broadcast %41 : vector<2x8x1xf32> to vector<2x8x8xf32>
    %43 = arith.subf %39, %42 : vector<2x8x8xf32>
    %44 = math.exp %43 : vector<2x8x8xf32>
    %cst_19 = arith.constant dense<0.000000e+00> : vector<2x8xf32>
    %45 = vector.multi_reduction <add>, %44, %cst_19 [2] : vector<2x8x8xf32> to vector<2x8xf32>
    %46 = vector.shape_cast %45 : vector<2x8xf32> to vector<2x8x1xf32>
    %47 = vector.broadcast %46 : vector<2x8x1xf32> to vector<2x8x8xf32>
    %48 = arith.divf %44, %47 : vector<2x8x8xf32>
    %49 = arith.addf %30, %48 : vector<2x8x8xf32>
    "tpu.trace_start"() <{level = 10 : i32, message = "blm,bmd->bld"}> : () -> ()
    %cst_20 = arith.constant dense<0.000000e+00> : vector<2x8x8xf32>
    %50 = tpu.matmul %48, %38, %cst_20 {dimension_numbers = #tpu.dot_dimension_numbers<[2], [1], [1], [2], [0, 0, 0, 1, 1, 2], [0], [0]>} : vector<2x8x8xf32>, vector<2x8x8xf32>, vector<2x8x8xf32> -> vector<2x8x8xf32>
    "tpu.trace_stop"() : () -> ()
    %51 = vector.shape_cast %50 : vector<2x8x8xf32> to vector<16x8xf32>
    %52 = vector.extract_strided_slice %12 {offsets = [0, 16], sizes = [16, 8], strides = [1, 1]} : vector<16x96xf32> to vector<16x8xf32>
    %53 = vector.shape_cast %52 : vector<16x8xf32> to vector<2x8x8xf32>
    %54 = vector.extract_strided_slice %12 {offsets = [0, 48], sizes = [16, 8], strides = [1, 1]} : vector<16x96xf32> to vector<16x8xf32>
    %55 = vector.shape_cast %54 : vector<16x8xf32> to vector<2x8x8xf32>
    %56 = vector.extract_strided_slice %12 {offsets = [0, 80], sizes = [16, 8], strides = [1, 1]} : vector<16x96xf32> to vector<16x8xf32>
    %57 = vector.shape_cast %56 : vector<16x8xf32> to vector<2x8x8xf32>
    "tpu.trace_start"() <{level = 10 : i32, message = "bld,bmd->blm"}> : () -> ()
    %cst_21 = arith.constant dense<0.000000e+00> : vector<2x8x8xf32>
    %58 = tpu.matmul %53, %55, %cst_21 {dimension_numbers = #tpu.dot_dimension_numbers<[2], [2], [1], [1], [0, 0, 0, 1, 1, 1], [0], [0]>} : vector<2x8x8xf32>, vector<2x8x8xf32>, vector<2x8x8xf32> -> vector<2x8x8xf32>
    "tpu.trace_stop"() : () -> ()
    %cst_22 = arith.constant dense<0xFF800000> : vector<2x8xf32>
    %59 = vector.multi_reduction <maximumf>, %58, %cst_22 [2] : vector<2x8x8xf32> to vector<2x8xf32>
    %60 = vector.shape_cast %59 : vector<2x8xf32> to vector<2x8x1xf32>
    %61 = vector.broadcast %60 : vector<2x8x1xf32> to vector<2x8x8xf32>
    %62 = arith.subf %58, %61 : vector<2x8x8xf32>
    %63 = math.exp %62 : vector<2x8x8xf32>
    %cst_23 = arith.constant dense<0.000000e+00> : vector<2x8xf32>
    %64 = vector.multi_reduction <add>, %63, %cst_23 [2] : vector<2x8x8xf32> to vector<2x8xf32>
    %65 = vector.shape_cast %64 : vector<2x8xf32> to vector<2x8x1xf32>
    %66 = vector.broadcast %65 : vector<2x8x1xf32> to vector<2x8x8xf32>
    %67 = arith.divf %63, %66 : vector<2x8x8xf32>
    %68 = arith.addf %49, %67 : vector<2x8x8xf32>
    "tpu.trace_start"() <{level = 10 : i32, message = "blm,bmd->bld"}> : () -> ()
    %cst_24 = arith.constant dense<0.000000e+00> : vector<2x8x8xf32>
    %69 = tpu.matmul %67, %57, %cst_24 {dimension_numbers = #tpu.dot_dimension_numbers<[2], [1], [1], [2], [0, 0, 0, 1, 1, 2], [0], [0]>} : vector<2x8x8xf32>, vector<2x8x8xf32>, vector<2x8x8xf32> -> vector<2x8x8xf32>
    "tpu.trace_stop"() : () -> ()
    %70 = vector.shape_cast %69 : vector<2x8x8xf32> to vector<16x8xf32>
    %71 = vector.extract_strided_slice %12 {offsets = [0, 24], sizes = [16, 8], strides = [1, 1]} : vector<16x96xf32> to vector<16x8xf32>
    %72 = vector.shape_cast %71 : vector<16x8xf32> to vector<2x8x8xf32>
    %73 = vector.extract_strided_slice %12 {offsets = [0, 56], sizes = [16, 8], strides = [1, 1]} : vector<16x96xf32> to vector<16x8xf32>
    %74 = vector.shape_cast %73 : vector<16x8xf32> to vector<2x8x8xf32>
    %75 = vector.extract_strided_slice %12 {offsets = [0, 88], sizes = [16, 8], strides = [1, 1]} : vector<16x96xf32> to vector<16x8xf32>
    %76 = vector.shape_cast %75 : vector<16x8xf32> to vector<2x8x8xf32>
    "tpu.trace_start"() <{level = 10 : i32, message = "bld,bmd->blm"}> : () -> ()
    %cst_25 = arith.constant dense<0.000000e+00> : vector<2x8x8xf32>
    %77 = tpu.matmul %72, %74, %cst_25 {dimension_numbers = #tpu.dot_dimension_numbers<[2], [2], [1], [1], [0, 0, 0, 1, 1, 1], [0], [0]>} : vector<2x8x8xf32>, vector<2x8x8xf32>, vector<2x8x8xf32> -> vector<2x8x8xf32>
    "tpu.trace_stop"() : () -> ()
    %cst_26 = arith.constant dense<0xFF800000> : vector<2x8xf32>
    %78 = vector.multi_reduction <maximumf>, %77, %cst_26 [2] : vector<2x8x8xf32> to vector<2x8xf32>
    %79 = vector.shape_cast %78 : vector<2x8xf32> to vector<2x8x1xf32>
    %80 = vector.broadcast %79 : vector<2x8x1xf32> to vector<2x8x8xf32>
    %81 = arith.subf %77, %80 : vector<2x8x8xf32>
    %82 = math.exp %81 : vector<2x8x8xf32>
    %cst_27 = arith.constant dense<0.000000e+00> : vector<2x8xf32>
    %83 = vector.multi_reduction <add>, %82, %cst_27 [2] : vector<2x8x8xf32> to vector<2x8xf32>
    %84 = vector.shape_cast %83 : vector<2x8xf32> to vector<2x8x1xf32>
    %85 = vector.broadcast %84 : vector<2x8x1xf32> to vector<2x8x8xf32>
    %86 = arith.divf %82, %85 : vector<2x8x8xf32>
    %87 = arith.addf %68, %86 : vector<2x8x8xf32>
    "tpu.trace_start"() <{level = 10 : i32, message = "blm,bmd->bld"}> : () -> ()
    %cst_28 = arith.constant dense<0.000000e+00> : vector<2x8x8xf32>
    %88 = tpu.matmul %86, %76, %cst_28 {dimension_numbers = #tpu.dot_dimension_numbers<[2], [1], [1], [2], [0, 0, 0, 1, 1, 2], [0], [0]>} : vector<2x8x8xf32>, vector<2x8x8xf32>, vector<2x8x8xf32> -> vector<2x8x8xf32>
    "tpu.trace_stop"() : () -> ()
    %89 = vector.shape_cast %88 : vector<2x8x8xf32> to vector<16x8xf32>
    %90 = tpu.concatenate %32, %51, %70, %89 in 1 : vector<16x8xf32>, vector<16x8xf32>, vector<16x8xf32>, vector<16x8xf32> -> vector<16x32xf32>
    %c0_29 = arith.constant 0 : index
    %c96 = arith.constant 96 : index
    %91 = vector.load %arg1[%c0_29, %c96] : memref<64x224xf32, #tpu.memory_space<vmem>>, vector<32x32xf32>
    %cst_30 = arith.constant dense<0.000000e+00> : vector<16x32xf32>
    %92 = tpu.matmul %90, %91, %cst_30 {dimension_numbers = #tpu.dot_dimension_numbers<[1], [0], [0], [1], [0, 0, 1, 1], [], []>} : vector<16x32xf32>, vector<32x32xf32>, vector<16x32xf32> -> vector<16x32xf32>
    %93 = vector.broadcast %2 : vector<1x32xf32> to vector<16x32xf32>
    %94 = arith.addf %92, %93 : vector<16x32xf32>
    %95 = arith.addf %94, %0 : vector<16x32xf32>
    %cst_31 = arith.constant dense<0.000000e+00> : vector<16xf32>
    %96 = vector.multi_reduction <add>, %95, %cst_31 [1] : vector<16x32xf32> to vector<16xf32>
    %97 = vector.shape_cast %96 : vector<16xf32> to vector<16x1xf32>
    %cst_32 = arith.constant 3.200000e+01 : f32
    %98 = vector.broadcast %cst_32 : f32 to vector<16x1xf32>
    %99 = arith.divf %97, %98 : vector<16x1xf32>
    %100 = vector.broadcast %99 : vector<16x1xf32> to vector<16x32xf32>
    %101 = arith.subf %95, %100 : vector<16x32xf32>
    %102 = arith.mulf %101, %101 : vector<16x32xf32>
    %cst_33 = arith.constant dense<0.000000e+00> : vector<16xf32>
    %103 = vector.multi_reduction <add>, %102, %cst_33 [1] : vector<16x32xf32> to vector<16xf32>
    %104 = vector.shape_cast %103 : vector<16xf32> to vector<16x1xf32>
    %cst_34 = arith.constant 3.200000e+01 : f32
    %105 = vector.broadcast %cst_34 : f32 to vector<16x1xf32>
    %106 = arith.divf %104, %105 : vector<16x1xf32>
    %107 = vector.broadcast %99 : vector<16x1xf32> to vector<16x32xf32>
    %108 = arith.subf %95, %107 : vector<16x32xf32>
    %cst_35 = arith.constant 9.99999974E-6 : f32
    %109 = vector.broadcast %cst_35 : f32 to vector<16x1xf32>
    %110 = arith.addf %106, %109 : vector<16x1xf32>
    %111 = math.rsqrt %110 : vector<16x1xf32>
    %112 = vector.broadcast %111 : vector<16x1xf32> to vector<16x32xf32>
    %113 = arith.mulf %108, %112 : vector<16x32xf32>
    %114 = vector.broadcast %3 : vector<1x32xf32> to vector<16x32xf32>
    %115 = arith.mulf %113, %114 : vector<16x32xf32>
    %116 = vector.broadcast %4 : vector<1x32xf32> to vector<16x32xf32>
    %117 = arith.addf %115, %116 : vector<16x32xf32>
    %c0_36 = arith.constant 0 : index
    %c128 = arith.constant 128 : index
    %118 = vector.load %arg1[%c0_36, %c128] : memref<64x224xf32, #tpu.memory_space<vmem>>, vector<32x64xf32>
    %cst_37 = arith.constant dense<0.000000e+00> : vector<16x64xf32>
    %119 = tpu.matmul %117, %118, %cst_37 {dimension_numbers = #tpu.dot_dimension_numbers<[1], [0], [0], [1], [0, 0, 1, 1], [], []>} : vector<16x32xf32>, vector<32x64xf32>, vector<16x64xf32> -> vector<16x64xf32>
    %120 = vector.broadcast %5 : vector<1x64xf32> to vector<16x64xf32>
    %121 = arith.addf %119, %120 : vector<16x64xf32>
    %cst_38 = arith.constant 0.000000e+00 : f32
    %122 = vector.broadcast %cst_38 : f32 to vector<16x64xf32>
    %123 = arith.maximumf %121, %122 : vector<16x64xf32>
    %c0_39 = arith.constant 0 : index
    %c192 = arith.constant 192 : index
    %124 = vector.load %arg1[%c0_39, %c192] : memref<64x224xf32, #tpu.memory_space<vmem>>, vector<64x32xf32>
    %cst_40 = arith.constant dense<0.000000e+00> : vector<16x32xf32>
    %125 = tpu.matmul %123, %124, %cst_40 {dimension_numbers = #tpu.dot_dimension_numbers<[1], [0], [0], [1], [0, 0, 1, 1], [], []>} : vector<16x64xf32>, vector<64x32xf32>, vector<16x32xf32> -> vector<16x32xf32>
    %126 = vector.broadcast %6 : vector<1x32xf32> to vector<16x32xf32>
    %127 = arith.addf %125, %126 : vector<16x32xf32>
    %128 = arith.addf %127, %117 : vector<16x32xf32>
    %cst_41 = arith.constant dense<0.000000e+00> : vector<16xf32>
    %129 = vector.multi_reduction <add>, %128, %cst_41 [1] : vector<16x32xf32> to vector<16xf32>
    %130 = vector.shape_cast %129 : vector<16xf32> to vector<16x1xf32>
    %cst_42 = arith.constant 3.200000e+01 : f32
    %131 = vector.broadcast %cst_42 : f32 to vector<16x1xf32>
    %132 = arith.divf %130, %131 : vector<16x1xf32>
    %133 = vector.broadcast %132 : vector<16x1xf32> to vector<16x32xf32>
    %134 = arith.subf %128, %133 : vector<16x32xf32>
    %135 = arith.mulf %134, %134 : vector<16x32xf32>
    %cst_43 = arith.constant dense<0.000000e+00> : vector<16xf32>
    %136 = vector.multi_reduction <add>, %135, %cst_43 [1] : vector<16x32xf32> to vector<16xf32>
    %137 = vector.shape_cast %136 : vector<16xf32> to vector<16x1xf32>
    %cst_44 = arith.constant 3.200000e+01 : f32
    %138 = vector.broadcast %cst_44 : f32 to vector<16x1xf32>
    %139 = arith.divf %137, %138 : vector<16x1xf32>
    %140 = vector.broadcast %132 : vector<16x1xf32> to vector<16x32xf32>
    %141 = arith.subf %128, %140 : vector<16x32xf32>
    %cst_45 = arith.constant 9.99999974E-6 : f32
    %142 = vector.broadcast %cst_45 : f32 to vector<16x1xf32>
    %143 = arith.addf %139, %142 : vector<16x1xf32>
    %144 = math.rsqrt %143 : vector<16x1xf32>
    %145 = vector.broadcast %144 : vector<16x1xf32> to vector<16x32xf32>
    %146 = arith.mulf %141, %145 : vector<16x32xf32>
    %147 = vector.broadcast %7 : vector<1x32xf32> to vector<16x32xf32>
    %148 = arith.mulf %146, %147 : vector<16x32xf32>
    %149 = vector.broadcast %8 : vector<1x32xf32> to vector<16x32xf32>
    %150 = arith.addf %148, %149 : vector<16x32xf32>
    %c0_46 = arith.constant 0 : index
    %c0_47 = arith.constant 0 : index
    %151 = vector.load %arg3[%c0_46, %c0_47] : memref<16x32xf32, #tpu.memory_space<vmem>>, vector<16x32xf32>
    tpu.vector_store %arg3[%c0_46, %c0_47], %150 {strides = array<i32>} : memref<16x32xf32, #tpu.memory_space<vmem>>, vector<16x32xf32>,
    %cst_48 = arith.constant 2.500000e-01 : f32
    %152 = vector.broadcast %cst_48 : f32 to vector<2x8x8xf32>
    %153 = arith.mulf %87, %152 : vector<2x8x8xf32>
    %c0_49 = arith.constant 0 : index
    %c0_50 = arith.constant 0 : index
    %c0_51 = arith.constant 0 : index
    %154 = vector.load %arg4[%c0_49, %c0_50, %c0_51] : memref<2x8x8xf32, #tpu.memory_space<vmem>>, vector<2x8x8xf32>
    tpu.vector_store %arg4[%c0_49, %c0_50, %c0_51], %153 {strides = array<i32>} : memref<2x8x8xf32, #tpu.memory_space<vmem>>, vector<2x8x8xf32>,
    return
  }
}

</mosaic_0001>

<bundles_post_ra>
// kernel: transformer_layer.1
= control target key start
LH: loop header
LB: loop body
LE: loop exit
PB: predicated region body
PF: predicated region fallthrough
CT: control target
= control target key end

     0   :  { %10 = vsyncpa [#allocation3], 0  ;;  %s2649_s0 = inlined_call_operand.hbm [shape: f32[16,32], index: 0, kind: input, shape index: {}]   ;;  %s2650_s1 = inlined_call_operand.hbm [shape: f32[64,224], index: 1, kind: input, shape index: {}]   ;;  %s2651_s2 = inlined_call_operand.hbm [shape: f32[8,128], index: 2, kind: input, shape index: {}]   ;;  %s2652_s3 = inlined_call_operand.hbm [shape: f32[16,32], index: 3, kind: output, shape index: {0}]   ;;  %s2653_s4 = inlined_call_operand.hbm [shape: f32[2,8,8], index: 4, kind: output, shape index: {1}]  }
   0x1   :  { %11 = vsyncpa [#allocation6], 0 }
   0x2   :  { %12 = vsyncpa [#allocation4], 0 }
   0x3   :  { %13 = vsyncpa [#allocation10], 0  ;;  %s2363_s15 = smov [#allocation5]  }
   0x4   :  { %s31_s16 = sshll.u32 %s2363_s15, 4  ;;  %s32_s16 = int_to_ptr.vmem [resolvable:$true] %s31_s16 }
   0x5   :  { %s2263_s17 = scalar_lea.vmem %s32_s16, 2048  ;;  %p2268_p1 = scmp.lt.s32.totalorder %s32_s16, %s32_s16 }
   0x6   :  { %p2264_p0 = scmp.ne.s32.totalorder %s32_s16, %s2263_s17  ;;  %p2269_p2 = scmp.lt.s32.totalorder %s2263_s17, %s2263_s17 }
   0x8   :  { %p2270_p3 = por %p2269_p2, %p2268_p1 }
   0xa   :  { %p2271_p4 = pnand %p2270_p3, %p2264_p0 }
   0xc   :  { %2274 = shalt.err (!%p2271_p4)
}
   0xd   :  { %s2364_s18 = smov 256   ;;  %s2365_s19 = smov 16  }
   0xe   :  { %37 = dma.hbm_to_vmem [thread:$0]  %s2650_s1, 2048, %s32_s16, [#allocation6], %s2364_s18, %s2364_s18, %s2365_s19  }
   0xf   :  { %s2366_s22 = smov [#allocation2]  }
  0x10   :  { %s19_s23 = sshll.u32 %s2366_s22, 4  ;;  %s20_s23 = int_to_ptr.vmem [resolvable:$true] %s19_s23 }
  0x11   :  { %s2283_s24 = scalar_lea.vmem %s20_s23, 256  ;;  %p2288_p6 = scmp.lt.s32.totalorder %s20_s23, %s20_s23 }
  0x12   :  { %p2284_p5 = scmp.ne.s32.totalorder %s20_s23, %s2283_s24  ;;  %p2289_p7 = scmp.lt.s32.totalorder %s2283_s24, %s2283_s24 }
  0x14   :  { %p2290_p8 = por %p2289_p7, %p2288_p6 }
  0x16   :  { %p2291_p9 = pnand %p2290_p8, %p2284_p5 }
  0x18   :  { %2294 = shalt.err (!%p2291_p9)
}
  0x19   :  { %s2367_s25 = smov 128   ;;  %s2368_s26 = smov 8  }
  0x1a   :  { %25 = dma.hbm_to_vmem [thread:$0]  %s2649_s0, 256, %s20_s23, [#allocation3], %s2367_s25, %s2367_s25, %s2368_s26  }
  0x1b   :  { %s2369_s1 = smov [#allocation7]  }
  0x1c   :  { %s44_s29 = sshll.u32 %s2369_s1, 4  ;;  %s45_s29 = int_to_ptr.vmem [resolvable:$true] %s44_s29 }
  0x1d   :  { %s2303_s30 = scalar_lea.vmem %s45_s29, 128  ;;  %p2308_p11 = scmp.lt.s32.totalorder %s45_s29, %s45_s29 }
  0x1e   :  { %p2304_p10 = scmp.ne.s32.totalorder %s45_s29, %s2303_s30  ;;  %p2309_p12 = scmp.lt.s32.totalorder %s2303_s30, %s2303_s30 }
  0x20   :  { %p2310_p13 = por %p2309_p12, %p2308_p11 }
  0x22   :  { %p2311_p0 = pnand %p2310_p13, %p2304_p10 }
  0x24   :  { %2314 = shalt.err (!%p2311_p0)
}
  0x25   :  { %47 = dma.hbm_to_vmem [thread:$0]  %s2651_s2, 128, %s45_s29, [#allocation6]  }
  0x26   :  { %2355 = dma.done.wait [#allocation3], 256  }
  0x27   :  { %2356 = vsyncadd [#allocation3], 4294967040 }
  0x28   :  { %2357 = dma.done.wait [#allocation6], 2176  }
  0x29   :  { %2358 = vsyncadd [#allocation6], 4294965120  ;;  %vm75_vm0 = vcmask 261120   ;;  %v2425_v0 = vld [vmem:[#allocation5 + $0x30] sm:$0xff]  ;;  %v2427_v1 = vld [vmem:[#allocation5 + $0x20] sm:$0xff]  ;;  %v2370_v6 = vmov 0.0  }
  0x2a   :  { %2059 = vmatprep.subr.mxu1 %v2425_v0  ;;  %v2430_v2 = vld [vmem:[#allocation2] sm:$0xff]  ;;  %v2439_v4 = vld [vmem:[#allocation5] sm:$0xff]  ;;  %v2443_v5 = vld [vmem:[#allocation2 + $0x8] sm:$0xff]  ;;  %2080 = vmatprep.subr.mxu0 %v2370_v6  ;;  %vm2371_vm1 = vmmov 0   ;;  %s2372_s0 = smov 96   ;;  %vm160_vm2 = vcmask 64512  }
  0x2b   :  { %2060 = vmatpush3.msra.mxu1 %v2425_v0  ;;  %v2433_v3 = vld [vmem:[#allocation5 + $0x10] sm:$0xff]  ;;  %2067 = vmatprep.mubr.msk.f32.mxu1 %vm75_vm0, %v2430_v2  ;;  %v1959_v8 = vld [vmem:[#allocation7] ss:$0 sm:$0xff]  ;;  %s2373_s2 = smov 64   ;;  %s2374_s7 = smov 88   ;;  %vm1510_vm3 = vcmask 130048  }
  0x2c   :  { %2061 = vmatprep.subr.mxu1 %v2427_v1  ;;  %2082 = vmatprep.mubr.msk.f32.mxu0 %vm2371_vm1, %v2370_v6  ;;  %s2375_s8 = smov 120   ;;  %s2376_s9 = smov 56   ;;  %vm1513_vm4 = vcmask 195584   ;;  %vm1797_vm5 = vcmask 523264  }
  0x2d   :  { %2062 = vmatpush3.msra.mxu1 %v2427_v1  ;;  %s2377_s10 = smov 80   ;;  %s2378_s11 = smov 112  }
  0x2e   :  { %2063 = vmatprep.subr.mxu1 %v2433_v3  ;;  %s2379_s12 = smov 48   ;;  %s2380_s13 = smov 72  }
  0x2f   :  { %2064 = vmatpush3.msra.mxu1 %v2433_v3  ;;  %s2381_s14 = smov 104   ;;  %s2382_s15 = smov 40  }
  0x30   :  { %2065 = vmatprep.subr.mxu1 %v2439_v4  ;;  %s2383_s16 = smov 32   ;;  %s2384_s17 = smov 24  }
  0x31   :  { %2066 = vmatpush3.msra.mxu1 %v2439_v4  ;;  %s2385_s18 = smov [#allocation9]  }
  0x32   :  { %2068 = vmatmul.mubr.msk.f32.vlgmr.msra.gmra.mxu1 %vm75_vm0, %v2443_v5  ;;  %2070 = vmatprep.subr.mxu1 %v2370_v6 }
  0x33   :  { %2072 = vmatprep.mubr.msk.f32.mxu1 %vm2371_vm1, %v2370_v6 }
  0xf2   :  { %v2069_v7 = vpop.f32.mrf.mxu1 }
  0xf3   :  { %v2458_v11 = vadd.f32 %v2069_v7, %v1959_v8 }
  0xf4   :  { %v148_v9 = vpop.f32.mrf.mxu1 }
  0xf5   :  { %v2455_v10 = vadd.f32 %v1959_v8, %v148_v9 }
  0xf7   :  { %158 = vrot.lane.b32.xlu0 %v2455_v10, %s2372_s0 }
  0xfb   :  { %236 = vrot.lane.b32.xlu0 %v2458_v11, %s2372_s0 }
 0x169   :  { %v159_v12 = vpop.permute.xlu0 %158 }
 0x16a   :  { %2071 = vmatpush3.xpose.msk.msra.mxu1 %vm160_vm2, %v159_v12 }
 0x16b   :  { %2075 = vmatprep.subr.mxu1 %v2370_v6 }
 0x16d   :  { %2073 = vmatmul.mubr.msk.f32.vlgmr.msra.gmra.mxu1 %vm160_vm2, %v2455_v10  ;;  %v237_v13 = vpop.permute.xlu0 %236 }
 0x16e   :  { %2076 = vmatpush3.xpose.msk.msra.mxu1 %vm160_vm2, %v237_v13  ;;  %2077 = vmatprep.mubr.msk.f32.mxu1 %vm2371_vm1, %v2370_v6 }
 0x16f   :  { %2085 = vmatprep.subr.mxu1 %v2370_v6 }
 0x171   :  { %2078 = vmatmul.mubr.msk.f32.vlgmr.msra.gmra.mxu1 %vm160_vm2, %v2458_v11 }
 0x172   :  { %2087 = vmatprep.mubr.msk.f32.mxu1 %vm2371_vm1, %v2370_v6 }
 0x22d   :  { %v231_v14 = vpop.f32.mrf.mxu1 }
 0x22e   :  { %v312_v15 = vsel %vm160_vm2, %v231_v14, -inf }
 0x22f   :  { %313 = vmax.xlane.f32.xlu1 %v312_v15  ;;  %v2074_v16 = vpop.f32.mrf.mxu1 }
 0x231   :  { %v308_v17 = vpop.f32.mrf.mxu1 }
 0x232   :  { %v315_v18 = vsel %vm160_vm2, %v308_v17, -inf }
 0x233   :  { %316 = vmax.xlane.f32.xlu1 %v315_v18  ;;  %v2079_v19 = vpop.f32.mrf.mxu1 }
 0x244   :  { %336 = vrot.lane.b32.xlu1 %v2455_v10, %s2373_s2 }
 0x248   :  { %412 = vrot.lane.b32.xlu1 %v2458_v11, %s2373_s2 }
 0x24c   :  { %490 = vrot.lane.b32.xlu1 %v2455_v10, %s2374_s7 }
 0x250   :  { %568 = vrot.lane.b32.xlu1 %v2458_v11, %s2374_s7 }
 0x2b8   :  { %v314_v20 = vpop.xlane.xlu1 %313 }
 0x2b9   :  { %v318_v21 = vsub.f32 %v231_v14, %v314_v20 }
 0x2bb   :  { %v320_v22 = vmul.f32 1.442695, %v318_v21 }
 0x2bc   :  { %v317_v23 = vpop.xlane.xlu1 %316 }
 0x2bd   :  { %2215 = vpow2.f32 %v320_v22  ;;  %v319_v24 = vsub.f32 %v308_v17, %v317_v23 }
 0x2bf   :  { %v322_v25 = vmul.f32 1.442695, %v319_v24 }
 0x2c0   :  { %v337_v26 = vpop.permute.xlu1 %336 }
 0x2c1   :  { %2217 = vpow2.f32 %v322_v25  ;;  %2081 = vmatpush3.msra.mxu0 %v337_v26 }
 0x2c2   :  { %2090 = vmatprep.subr.mxu0 %v2370_v6 }
 0x2c4   :  { %v413_v27 = vpop.permute.xlu1 %412 }
 0x2c5   :  { %2086 = vmatpush3.msra.mxu1 %v413_v27 }
 0x2c6   :  { %2095 = vmatprep.subr.mxu1 %v2370_v6 }
 0x2c8   :  { %v491_v32 = vpop.permute.xlu1 %490 }
 0x2ca   :  { %v2216_v28 = vpop.eup %2215 }
 0x2cb   :  { %v324_v29 = vsel %vm160_vm2, %v2216_v28, 0.0 }
 0x2cc   :  { %325 = vadd.xlane.f32.xlu0 %v324_v29  ;;  %v569_v33 = vpop.permute.xlu1 %568 }
 0x2ce   :  { %v2218_v30 = vpop.eup %2217 }
 0x2cf   :  { %v327_v31 = vsel %vm160_vm2, %v2218_v30, 0.0 }
 0x2d0   :  { %328 = vadd.xlane.f32.xlu1 %v327_v31 }
 0x2e1   :  { %566 = vrot.lane.b32.xlu1 %v2458_v11, %s2375_s8 }
 0x2e2   :  { %488 = vrot.lane.b32.xlu0 %v2455_v10, %s2375_s8 }
 0x355   :  { %v326_v34 = vpop.xlane.xlu0 %325 }
 0x356   :  { %2219 = vrcp.f32 %v326_v34 }
 0x359   :  { %v329_v35 = vpop.xlane.xlu1 %328  ;;  %v489_v40 = vpop.permute.xlu0 %488 }
 0x35a   :  { %2221 = vrcp.f32 %v329_v35 }
 0x35d   :  { %v567_v41 = vpop.permute.xlu1 %566 }
 0x363   :  { %v2220_v36 = vpop.eup %2219 }
 0x364   :  { %v2487_v37 = vmul.f32 %v2220_v36, %v2216_v28 }
 0x366   :  { %2083 = vmatmul.mubr.msk.f32.vlgmr.msra.gmra.mxu0 %vm160_vm2, %v2487_v37 }
 0x367   :  { %v2222_v38 = vpop.eup %2221  ;;  %2091 = vmatpush3.xpose.msk.msra.mxu0 %vm160_vm2, %v491_v32  ;;  %2092 = vmatprep.mubr.msk.f32.mxu0 %vm2371_vm1, %v2370_v6 }
 0x368   :  { %v2494_v39 = vmul.f32 %v2222_v38, %v2218_v30  ;;  %2100 = vmatprep.subr.mxu0 %v2370_v6 }
 0x36a   :  { %2088 = vmatmul.mubr.msk.f32.vlgmr.msra.gmra.mxu1 %vm160_vm2, %v2494_v39  ;;  %2093 = vmatmul.mubr.msk.f32.vlgmr.msra.gmra.mxu0 %vm160_vm2, %v489_v40 }
 0x36b   :  { %2096 = vmatpush3.xpose.msk.msra.mxu1 %vm160_vm2, %v569_v33  ;;  %2097 = vmatprep.mubr.msk.f32.mxu1 %vm2371_vm1, %v2370_v6 }
 0x36c   :  { %2105 = vmatprep.subr.mxu1 %v2370_v6  ;;  %2102 = vmatprep.mubr.msk.f32.mxu0 %vm2371_vm1, %v2370_v6 }
 0x36e   :  { %2098 = vmatmul.mubr.msk.f32.vlgmr.msra.gmra.mxu1 %vm160_vm2, %v567_v41 }
 0x36f   :  { %2107 = vmatprep.mubr.msk.f32.mxu1 %vm2371_vm1, %v2370_v6 }
 0x426   :  { %v2509_v42 = vpop.f32.mrf.mxu0 }
 0x428   :  { %v2084_v43 = vpop.f32.mrf.mxu0 }
 0x42a   :  { %v2511_v44 = vpop.f32.mrf.mxu1  ;;  %v562_v45 = vpop.f32.mrf.mxu0 }
 0x42b   :  { %v644_v46 = vsel %vm160_vm2, %v562_v45, -inf }
 0x42c   :  { %v2089_v47 = vpop.f32.mrf.mxu1  ;;  %645 = vmax.xlane.f32.xlu1 %v644_v46  ;;  %v2094_v48 = vpop.f32.mrf.mxu0 }
 0x42e   :  { %v640_v49 = vpop.f32.mrf.mxu1 }
 0x42f   :  { %v647_v50 = vsel %vm160_vm2, %v640_v49, -inf }
 0x430   :  { %648 = vmax.xlane.f32.xlu0 %v647_v50  ;;  %v2099_v51 = vpop.f32.mrf.mxu1 }
 0x43d   :  { %668 = vrot.lane.b32.xlu1 %v2455_v10, %s2376_s9 }
 0x441   :  { %822 = vrot.lane.b32.xlu1 %v2455_v10, %s2377_s10 }
 0x445   :  { %900 = vrot.lane.b32.xlu1 %v2458_v11, %s2377_s10 }
 0x446   :  { %744 = vrot.lane.b32.xlu0 %v2458_v11, %s2376_s9 }
 0x44a   :  { %820 = vrot.lane.b32.xlu0 %v2455_v10, %s2378_s11 }
 0x4b5   :  { %v646_v52 = vpop.xlane.xlu1 %645 }
 0x4b6   :  { %v650_v53 = vsub.f32 %v562_v45, %v646_v52 }
 0x4b8   :  { %v652_v54 = vmul.f32 1.442695, %v650_v53 }
 0x4b9   :  { %v669_v55 = vpop.permute.xlu1 %668  ;;  %v649_v56 = vpop.xlane.xlu0 %648 }
 0x4ba   :  { %2223 = vpow2.f32 %v652_v54  ;;  %v651_v57 = vsub.f32 %v640_v49, %v649_v56  ;;  %2101 = vmatpush3.msra.mxu0 %v669_v55 }
 0x4bb   :  { %2110 = vmatprep.subr.mxu0 %v2370_v6 }
 0x4bc   :  { %v654_v58 = vmul.f32 1.442695, %v651_v57 }
 0x4bd   :  { %v745_v59 = vpop.permute.xlu0 %744  ;;  %v823_v7 = vpop.permute.xlu1 %822 }
 0x4be   :  { %2225 = vpow2.f32 %v654_v58  ;;  %2106 = vmatpush3.msra.mxu1 %v745_v59 }
 0x4bf   :  { %2115 = vmatprep.subr.mxu1 %v2370_v6 }
 0x4c1   :  { %v901_v8 = vpop.permute.xlu1 %900  ;;  %v821_v17 = vpop.permute.xlu0 %820 }
 0x4c7   :  { %v2224_v60 = vpop.eup %2223 }
 0x4c8   :  { %v656_v61 = vsel %vm160_vm2, %v2224_v60, 0.0 }
 0x4c9   :  { %657 = vadd.xlane.f32.xlu1 %v656_v61 }
 0x4cb   :  { %v2226_v62 = vpop.eup %2225 }
 0x4cc   :  { %v659_v63 = vsel %vm160_vm2, %v2226_v62, 0.0 }
 0x4cd   :  { %660 = vadd.xlane.f32.xlu1 %v659_v63 }
 0x4de   :  { %898 = vrot.lane.b32.xlu1 %v2458_v11, %s2378_s11 }
 0x552   :  { %v658_v9 = vpop.xlane.xlu1 %657 }
 0x553   :  { %2227 = vrcp.f32 %v658_v9 }
 0x556   :  { %v661_v12 = vpop.xlane.xlu1 %660 }
 0x557   :  { %2229 = vrcp.f32 %v661_v12 }
 0x55a   :  { %v899_v18 = vpop.permute.xlu1 %898 }
 0x560   :  { %v2228_v13 = vpop.eup %2227 }
 0x561   :  { %v2525_v14 = vmul.f32 %v2228_v13, %v2224_v60 }
 0x563   :  { %2103 = vmatmul.mubr.msk.f32.vlgmr.msra.gmra.mxu0 %vm160_vm2, %v2525_v14  ;;  %v666_v50 = vadd.f32 %v2525_v14, %v2487_v37 }
 0x564   :  { %v2230_v15 = vpop.eup %2229  ;;  %2111 = vmatpush3.xpose.msk.msra.mxu0 %vm160_vm2, %v823_v7  ;;  %2112 = vmatprep.mubr.msk.f32.mxu0 %vm2371_vm1, %v2370_v6 }
 0x565   :  { %v2532_v16 = vmul.f32 %v2230_v15, %v2226_v62  ;;  %2120 = vmatprep.subr.mxu0 %v2370_v6 }
 0x567   :  { %2108 = vmatmul.mubr.msk.f32.vlgmr.msra.gmra.mxu1 %vm160_vm2, %v2532_v16  ;;  %2113 = vmatmul.mubr.msk.f32.vlgmr.msra.gmra.mxu0 %vm160_vm2, %v821_v17  ;;  %v667_v55 = vadd.f32 %v2532_v16, %v2494_v39 }
 0x568   :  { %2116 = vmatpush3.xpose.msk.msra.mxu1 %vm160_vm2, %v901_v8  ;;  %2117 = vmatprep.mubr.msk.f32.mxu1 %vm2371_vm1, %v2370_v6 }
 0x569   :  { %2125 = vmatprep.subr.mxu1 %v2370_v6  ;;  %2122 = vmatprep.mubr.msk.f32.mxu0 %vm2371_vm1, %v2370_v6 }
 0x56b   :  { %2118 = vmatmul.mubr.msk.f32.vlgmr.msra.gmra.mxu1 %vm160_vm2, %v899_v18 }
 0x56c   :  { %2127 = vmatprep.mubr.msk.f32.mxu1 %vm2371_vm1, %v2370_v6 }
 0x623   :  { %v2547_v19 = vpop.f32.mrf.mxu0 }
 0x625   :  { %v2104_v20 = vpop.f32.mrf.mxu0 }
 0x627   :  { %v2549_v21 = vpop.f32.mrf.mxu1  ;;  %v894_v22 = vpop.f32.mrf.mxu0 }
 0x628   :  { %v976_v23 = vsel %vm160_vm2, %v894_v22, -inf }
 0x629   :  { %v2109_v24 = vpop.f32.mrf.mxu1  ;;  %977 = vmax.xlane.f32.xlu0 %v976_v23  ;;  %v2114_v25 = vpop.f32.mrf.mxu0 }
 0x62b   :  { %v972_v26 = vpop.f32.mrf.mxu1 }
 0x62c   :  { %v979_v27 = vsel %vm160_vm2, %v972_v26, -inf }
 0x62d   :  { %980 = vmax.xlane.f32.xlu1 %v979_v27  ;;  %v2119_v28 = vpop.f32.mrf.mxu1 }
 0x63e   :  { %1000 = vrot.lane.b32.xlu1 %v2455_v10, %s2379_s12 }
 0x63f   :  { %1076 = vrot.lane.b32.xlu0 %v2458_v11, %s2379_s12 }
 0x642   :  { %1154 = vrot.lane.b32.xlu1 %v2455_v10, %s2380_s13 }
 0x646   :  { %1232 = vrot.lane.b32.xlu1 %v2458_v11, %s2380_s13 }
 0x64a   :  { %1230 = vrot.lane.b32.xlu1 %v2458_v11, %s2381_s14 }
 0x6b2   :  { %v978_v29 = vpop.xlane.xlu0 %977 }
 0x6b3   :  { %v982_v30 = vsub.f32 %v894_v22, %v978_v29 }
 0x6b5   :  { %v984_v31 = vmul.f32 1.442695, %v982_v30 }
 0x6b6   :  { %v981_v32 = vpop.xlane.xlu1 %980  ;;  %v1077_v33 = vpop.permute.xlu0 %1076 }
 0x6b7   :  { %2231 = vpow2.f32 %v984_v31  ;;  %v983_v34 = vsub.f32 %v972_v26, %v981_v32  ;;  %2126 = vmatpush3.msra.mxu1 %v1077_v33 }
 0x6b8   :  { %2135 = vmatprep.subr.mxu1 %v2370_v6 }
 0x6b9   :  { %v986_v35 = vmul.f32 1.442695, %v983_v34 }
 0x6ba   :  { %v1001_v36 = vpop.permute.xlu1 %1000 }
 0x6bb   :  { %2233 = vpow2.f32 %v986_v35  ;;  %2121 = vmatpush3.msra.mxu0 %v1001_v36 }
 0x6bc   :  { %2130 = vmatprep.subr.mxu0 %v2370_v6 }
 0x6be   :  { %v1155_v47 = vpop.permute.xlu1 %1154 }
 0x6c2   :  { %v1233_v53 = vpop.permute.xlu1 %1232 }
 0x6c4   :  { %v2232_v38 = vpop.eup %2231 }
 0x6c5   :  { %v988_v40 = vsel %vm160_vm2, %v2232_v38, 0.0 }
 0x6c6   :  { %989 = vadd.xlane.f32.xlu0 %v988_v40  ;;  %v1231_v57 = vpop.permute.xlu1 %1230 }
 0x6c8   :  { %v2234_v41 = vpop.eup %2233 }
 0x6c9   :  { %v991_v43 = vsel %vm160_vm2, %v2234_v41, 0.0 }
 0x6ca   :  { %992 = vadd.xlane.f32.xlu0 %v991_v43 }
 0x6e0   :  { %1152 = vrot.lane.b32.xlu0 %v2455_v10, %s2381_s14 }
 0x74f   :  { %v990_v45 = vpop.xlane.xlu0 %989 }
 0x750   :  { %2235 = vrcp.f32 %v990_v45 }
 0x753   :  { %v993_v46 = vpop.xlane.xlu0 %992 }
 0x754   :  { %2237 = vrcp.f32 %v993_v46 }
 0x757   :  { %v1153_v56 = vpop.permute.xlu0 %1152 }
 0x75d   :  { %v2236_v48 = vpop.eup %2235 }
 0x75e   :  { %v995_v49 = vmul.f32 %v2236_v48, %v2232_v38 }
 0x760   :  { %2123 = vmatmul.mubr.msk.f32.vlgmr.msra.gmra.mxu0 %vm160_vm2, %v995_v49  ;;  %v2566_v51 = vadd.f32 %v995_v49, %v666_v50 }
 0x761   :  { %v2238_v52 = vpop.eup %2237  ;;  %2131 = vmatpush3.xpose.msk.msra.mxu0 %vm160_vm2, %v1155_v47  ;;  %2132 = vmatprep.mubr.msk.f32.mxu0 %vm2371_vm1, %v2370_v6 }
 0x762   :  { %v997_v54 = vmul.f32 %v2238_v52, %v2234_v41  ;;  %2140 = vmatprep.subr.mxu0 %v2370_v6 }
 0x764   :  { %2128 = vmatmul.mubr.msk.f32.vlgmr.msra.gmra.mxu1 %vm160_vm2, %v997_v54  ;;  %2133 = vmatmul.mubr.msk.f32.vlgmr.msra.gmra.mxu0 %vm160_vm2, %v1153_v56  ;;  %v2576_v37 = vadd.f32 %v997_v54, %v667_v55 }
 0x765   :  { %2136 = vmatpush3.xpose.msk.msra.mxu1 %vm160_vm2, %v1233_v53  ;;  %2137 = vmatprep.mubr.msk.f32.mxu1 %vm2371_vm1, %v2370_v6 }
 0x766   :  { %2145 = vmatprep.subr.mxu1 %v2370_v6  ;;  %2142 = vmatprep.mubr.msk.f32.mxu0 %vm2371_vm1, %v2370_v6 }
 0x768   :  { %2138 = vmatmul.mubr.msk.f32.vlgmr.msra.gmra.mxu1 %vm160_vm2, %v1231_v57 }
 0x769   :  { %2147 = vmatprep.mubr.msk.f32.mxu1 %vm2371_vm1, %v2370_v6 }
 0x820   :  { %v1072_v39 = vpop.f32.mrf.mxu0 }
 0x822   :  { %v2124_v58 = vpop.f32.mrf.mxu0 }
 0x824   :  { %v1148_v59 = vpop.f32.mrf.mxu1  ;;  %v1226_v60 = vpop.f32.mrf.mxu0 }
 0x825   :  { %v1308_v61 = vsel %vm160_vm2, %v1226_v60, -inf }
 0x826   :  { %v2129_v62 = vpop.f32.mrf.mxu1  ;;  %1309 = vmax.xlane.f32.xlu0 %v1308_v61  ;;  %v2134_v63 = vpop.f32.mrf.mxu0 }
 0x828   :  { %v1304_v7 = vpop.f32.mrf.mxu1 }
 0x829   :  { %v1311_v8 = vsel %vm160_vm2, %v1304_v7, -inf }
 0x82a   :  { %1312 = vmax.xlane.f32.xlu1 %v1311_v8  ;;  %v2139_v9 = vpop.f32.mrf.mxu1  ;;  %v1665_v8 = vld [vmem:[#allocation5 + $0x38] sm:$0xff] }
 0x82b   :  { %v1663_v9 = vld [vmem:[#allocation5 + $0x18] sm:$0xff] }
 0x83b   :  { %1332 = vrot.lane.b32.xlu1 %v2455_v10, %s2382_s15 }
 0x83f   :  { %1534 = vrot.lane.b32.xlu1 %v2425_v0, %s2383_s16 }
 0x843   :  { %1532 = vrot.lane.b32.xlu1 %v2427_v1, %s2383_s16 }
 0x847   :  { %1530 = vrot.lane.b32.xlu1 %v2433_v3, %s2383_s16 }
 0x84b   :  { %1494 = vrot.lane.b32.xlu1 %v1072_v39, %s2365_s19 }
 0x8af   :  { %v1310_v6 = vpop.xlane.xlu0 %1309 }
 0x8b0   :  { %v1314_v12 = vsub.f32 %v1226_v60, %v1310_v6  ;;  %v1662_v6 = vld [vmem:[#allocation5 + $0x8] sm:$0xff] }
 0x8b2   :  { %v1316_v13 = vmul.f32 1.442695, %v1314_v12  ;;  %v1760_v12 = vld [vmem:[#allocation5 + $0x78] sm:$0xff] }
 0x8b3   :  { %v1313_v14 = vpop.xlane.xlu1 %1312 }
 0x8b4   :  { %2239 = vpow2.f32 %v1316_v13  ;;  %v1315_v15 = vsub.f32 %v1304_v7, %v1313_v14  ;;  %v1759_v13 = vld [vmem:[#allocation5 + $0x68] sm:$0xff]  ;;  %v1758_v14 = vld [vmem:[#allocation5 + $0x58] sm:$0xff] }
 0x8b6   :  { %v1318_v16 = vmul.f32 1.442695, %v1315_v15  ;;  %v1757_v15 = vld [vmem:[#allocation5 + $0x48] sm:$0xff] }
 0x8b7   :  { %v1333_v17 = vpop.permute.xlu1 %1332 }
 0x8b8   :  { %2241 = vpow2.f32 %v1318_v16  ;;  %2141 = vmatpush3.msra.mxu0 %v1333_v17 }
 0x8bb   :  { %v1535_v10 = vpop.permute.xlu1 %1534 }
 0x8bc   :  { %2150 = vmatprep.subr.mxu0 %v1535_v10 }
 0x8bf   :  { %v1533_v25 = vpop.permute.xlu1 %1532 }
 0x8c1   :  { %v2240_v18 = vpop.eup %2239 }
 0x8c2   :  { %v1320_v0 = vsel %vm160_vm2, %v2240_v18, 0.0 }
 0x8c3   :  { %1321 = vadd.xlane.f32.xlu0 %v1320_v0  ;;  %v1531_v28 = vpop.permute.xlu1 %1530 }
 0x8c5   :  { %v2242_v1 = vpop.eup %2241 }
 0x8c6   :  { %v1323_v3 = vsel %vm160_vm2, %v2242_v1, 0.0 }
 0x8c7   :  { %1324 = vadd.xlane.f32.xlu0 %v1323_v3  ;;  %v1495_v40 = vpop.permute.xlu1 %1494 }
 0x8dd   :  { %1408 = vrot.lane.b32.xlu0 %v2458_v11, %s2382_s15 }
 0x8e1   :  { %1486 = vrot.lane.b32.xlu0 %v2547_v19, %s2368_s26 }
 0x8e5   :  { %1488 = vrot.lane.b32.xlu0 %v2549_v21, %s2368_s26 }
 0x8e9   :  { %1496 = vrot.lane.b32.xlu0 %v1148_v59, %s2365_s19  ;;  %s1942_s19 = sshll.u32 %s2385_s18, 4  ;;  %s1943_s19 = int_to_ptr.vmem [resolvable:$true] %s1942_s19 }
 0x8ea   :  { %s2315_s20 = scalar_lea.vmem %s1943_s19, 256  ;;  %p2320_p2 = scmp.lt.s32.totalorder %s1943_s19, %s1943_s19 }
 0x8eb   :  { %p2316_p1 = scmp.ne.s32.totalorder %s1943_s19, %s2315_s20  ;;  %p2321_p3 = scmp.lt.s32.totalorder %s2315_s20, %s2315_s20 }
 0x8ed   :  { %1528 = vrot.lane.b32.xlu0 %v2439_v4, %s2383_s16  ;;  %p2322_p4 = por %p2321_p3, %p2320_p2 }
 0x8ef   :  { %p2323_p5 = pnand %p2322_p4, %p2316_p1 }
 0x94c   :  { %v1322_v20 = vpop.xlane.xlu0 %1321 }
 0x94d   :  { %2243 = vrcp.f32 %v1322_v20 }
 0x950   :  { %v1325_v22 = vpop.xlane.xlu0 %1324 }
 0x951   :  { %2245 = vrcp.f32 %v1325_v22 }
 0x954   :  { %v1409_v23 = vpop.permute.xlu0 %1408 }
 0x955   :  { %2146 = vmatpush3.msra.mxu1 %v1409_v23  ;;  %v1989_v23 = vld [vmem:[#allocation7 + $0x2] ss:$0 sm:$0xff] }
 0x956   :  { %2161 = vmatprep.subr.mxu1 %v1665_v8 }
 0x958   :  { %v1487_v30 = vpop.permute.xlu0 %1486 }
 0x959   :  { %v1508_v41 = vsel %vm160_vm2, %v2509_v42, %v1487_v30 }
 0x95a   :  { %v2244_v24 = vpop.eup %2243  ;;  %v1511_v43 = vsel %vm1510_vm3, %v1508_v41, %v1495_v40 }
 0x95b   :  { %v1327_v26 = vmul.f32 %v2244_v24, %v2240_v18 }
 0x95c   :  { %v1489_v31 = vpop.permute.xlu0 %1488 }
 0x95d   :  { %2143 = vmatmul.mubr.msk.f32.vlgmr.msra.gmra.mxu0 %vm160_vm2, %v1327_v26  ;;  %v1330_v11 = vadd.f32 %v1327_v26, %v2566_v51  ;;  %v1509_v47 = vsel %vm160_vm2, %v2511_v44, %v1489_v31  ;;  %v1986_v51 = vld [vmem:[#allocation7 + $0x1] ss:$0 sm:$0xff] }
 0x95e   :  { %v2246_v19 = vpop.eup %2245  ;;  %2151 = vmatpush3.msra.mxu0 %v1535_v10 }
 0x95f   :  { %v1329_v21 = vmul.f32 %v2246_v19, %v2242_v1  ;;  %2152 = vmatprep.subr.mxu0 %v1533_v25  ;;  %v1921_v27 = vmul.f32 0.25, %v1330_v11 }
 0x960   :  { %2153 = vmatpush3.msra.mxu0 %v1533_v25  ;;  %v1497_v32 = vpop.permute.xlu0 %1496  ;;  %v1990_v25 = vld [vmem:[#allocation7 + $0x3] ss:$0 sm:$0xff] }
 0x961   :  { %2148 = vmatmul.mubr.msk.f32.vlgmr.msra.gmra.mxu1 %vm160_vm2, %v1329_v21  ;;  %2154 = vmatprep.subr.mxu0 %v1531_v28  ;;  %v1331_v4 = vadd.f32 %v1329_v21, %v2576_v37  ;;  %1923 = vst.msk [vmem:[#allocation9] sm:$0xff] %vm160_vm2, %v1921_v27  ;;  %v1512_v48 = vsel %vm1510_vm3, %v1509_v47, %v1497_v32 }
 0x962   :  { %2155 = vmatpush3.msra.mxu0 %v1531_v28  ;;  %2162 = vmatpush3.msra.mxu1 %v1665_v8 }
 0x963   :  { %v1922_v29 = vmul.f32 0.25, %v1331_v4 }
 0x964   :  { %v1529_v33 = vpop.permute.xlu0 %1528 }
 0x965   :  { %1924 = vst.msk [vmem:[#allocation9 + $0x8] sm:$0xff] %vm160_vm2, %v1922_v29  ;;  %2156 = vmatprep.subr.mxu0 %v1529_v33 }
 0x966   :  { %2157 = vmatpush3.msra.mxu0 %v1529_v33 }
 0xa1d   :  { %v1404_v34 = vpop.f32.mrf.mxu0 }
 0xa1e   :  { %1502 = vrot.lane.b32.xlu1 %v1404_v34, %s2384_s17  ;;  %v1991_v34 = vld [vmem:[#allocation7 + $0x4] ss:$0 sm:$0xff] }
 0xa1f   :  { %v2144_v35 = vpop.f32.mrf.mxu0 }
 0xa21   :  { %v1480_v36 = vpop.f32.mrf.mxu1 }
 0xa22   :  { %1504 = vrot.lane.b32.xlu1 %v1480_v36, %s2384_s17 }
 0xa23   :  { %v2149_v38 = vpop.f32.mrf.mxu1 }
 0xa90   :  { %v1503_v45 = vpop.permute.xlu1 %1502 }
 0xa91   :  { %v1514_v46 = vsel %vm1513_vm4, %v1511_v43, %v1503_v45  ;;  %v1994_v45 = vld [vmem:[#allocation7 + $0x5] ss:$0 sm:$0xff] }
 0xa92   :  { %2158 = vmatprep.mubr.msk.f32.mxu0 %vm75_vm0, %v1514_v46 }
 0xa94   :  { %v1505_v49 = vpop.permute.xlu1 %1504 }
 0xa95   :  { %v1515_v50 = vsel %vm1513_vm4, %v1512_v48, %v1505_v49 }
 0xa96   :  { %2159 = vmatmul.mubr.msk.f32.vlgmr.msra.gmra.mxu0 %vm75_vm0, %v1515_v50 }
 0xb56   :  { %v2160_v52 = vpop.f32.mrf.mxu0 }
 0xb57   :  { %v1618_v53 = vadd.f32 %v2160_v52, %v1986_v51 }
 0xb58   :  { %v1612_v54 = vpop.f32.mrf.mxu0 }
 0xb59   :  { %v1613_v42 = vadd.f32 %v1986_v51, %v1612_v54  ;;  %v1622_v55 = vadd.f32 %v1618_v53, %v2443_v5 }
 0xb5b   :  { %v1626_v56 = vsel %vm75_vm0, %v1622_v55, 0.0  ;;  %v1621_v37 = vadd.f32 %v1613_v42, %v2430_v2  ;;  %v1664_v2 = vld [vmem:[#allocation5 + $0x28] sm:$0xff] }
 0xb5c   :  { %1627 = vadd.xlane.f32.xlu1 %v1626_v56  ;;  %2163 = vmatprep.subr.mxu1 %v1664_v2 }
 0xb5d   :  { %v1623_v57 = vsel %vm75_vm0, %v1621_v37, 0.0  ;;  %2164 = vmatpush3.msra.mxu1 %v1664_v2 }
 0xb5e   :  { %1624 = vadd.xlane.f32.xlu0 %v1623_v57  ;;  %2165 = vmatprep.subr.mxu1 %v1663_v9 }
 0xb5f   :  { %2166 = vmatpush3.msra.mxu1 %v1663_v9 }
 0xb60   :  { %2167 = vmatprep.subr.mxu1 %v1662_v6 }
 0xb61   :  { %2168 = vmatpush3.msra.mxu1 %v1662_v6 }
 0xb6d   :  { %1787 = vrot.lane.b32.xlu1 %v1760_v12, %s2373_s2 }
 0xb71   :  { %1783 = vrot.lane.b32.xlu1 %v1758_v14, %s2373_s2 }
 0xb75   :  { %1781 = vrot.lane.b32.xlu1 %v1757_v15, %s2373_s2 }
 0xb79   :  { %1777 = vrot.lane.b32.xlu1 %v1664_v2, %s2373_s2 }
 0xb7d   :  { %1773 = vrot.lane.b32.xlu1 %v1662_v6, %s2373_s2 }
 0xbe5   :  { %v1628_v44 = vpop.xlane.xlu1 %1627 }
 0xbe6   :  { %v1631_v39 = vmul.f32 0.03125, %v1628_v44 }
 0xbe7   :  { %v1625_v58 = vpop.xlane.xlu0 %1624 }
 0xbe8   :  { %v1630_v59 = vmul.f32 0.03125, %v1625_v58  ;;  %v1633_v60 = vsub.f32 %v1622_v55, %v1631_v39 }
 0xbe9   :  { %v1788_v3 = vpop.permute.xlu1 %1787 }
 0xbea   :  { %v1632_v61 = vsub.f32 %v1621_v37, %v1630_v59  ;;  %v1635_v7 = vmul.f32 %v1633_v60, %v1633_v60  ;;  %2172 = vmatprep.subr.mxu0 %v1788_v3 }
 0xbeb   :  { %2173 = vmatpush3.msra.mxu0 %v1788_v3 }
 0xbec   :  { %v1634_v62 = vmul.f32 %v1632_v61, %v1632_v61  ;;  %v1639_v5 = vsel %vm75_vm0, %v1635_v7, 0.0 }
 0xbed   :  { %v1784_v26 = vpop.permute.xlu1 %1783 }
 0xbee   :  { %v1636_v63 = vsel %vm75_vm0, %v1634_v62, 0.0 }
 0xbef   :  { %1637 = vadd.xlane.f32.xlu0 %v1636_v63 }
 0xbf1   :  { %v1782_v28 = vpop.permute.xlu1 %1781 }
 0xbf3   :  { %1640 = vadd.xlane.f32.xlu0 %v1639_v5 }
 0xbf5   :  { %v1778_v31 = vpop.permute.xlu1 %1777 }
 0xbf9   :  { %v1774_v33 = vpop.permute.xlu1 %1773 }
 0xc09   :  { %1785 = vrot.lane.b32.xlu0 %v1759_v13, %s2373_s2 }
 0xc0d   :  { %1779 = vrot.lane.b32.xlu0 %v1665_v8, %s2373_s2 }
 0xc11   :  { %1775 = vrot.lane.b32.xlu0 %v1663_v9, %s2373_s2 }
 0xc78   :  { %v1638_v16 = vpop.xlane.xlu0 %1637 }
 0xc79   :  { %v1642_v17 = vmul.f32 0.03125, %v1638_v16 }
 0xc7b   :  { %v1644_v10 = vadd.f32 1e-05, %v1642_v17 }
 0xc7c   :  { %v1641_v18 = vpop.xlane.xlu0 %1640 }
 0xc7d   :  { %2247 = vrsqrt.f32 %v1644_v10  ;;  %v1643_v0 = vmul.f32 0.03125, %v1641_v18 }
 0xc7f   :  { %v1645_v1 = vadd.f32 1e-05, %v1643_v0 }
 0xc80   :  { %v1786_v20 = vpop.permute.xlu0 %1785 }
 0xc81   :  { %2249 = vrsqrt.f32 %v1645_v1  ;;  %2174 = vmatprep.subr.mxu0 %v1786_v20 }
 0xc82   :  { %2175 = vmatpush3.msra.mxu0 %v1786_v20 }
 0xc83   :  { %2176 = vmatprep.subr.mxu0 %v1784_v26 }
 0xc84   :  { %2177 = vmatpush3.msra.mxu0 %v1784_v26  ;;  %v1780_v4 = vpop.permute.xlu0 %1779 }
 0xc85   :  { %2178 = vmatprep.subr.mxu0 %v1782_v28 }
 0xc86   :  { %2179 = vmatpush3.msra.mxu0 %v1782_v28 }
 0xc87   :  { %2180 = vmatprep.subr.mxu0 %v1780_v4 }
 0xc88   :  { %2181 = vmatpush3.msra.mxu0 %v1780_v4  ;;  %v1776_v32 = vpop.permute.xlu0 %1775 }
 0xc89   :  { %2182 = vmatprep.subr.mxu0 %v1778_v31 }
 0xc8a   :  { %v2248_v22 = vpop.eup %2247  ;;  %2183 = vmatpush3.msra.mxu0 %v1778_v31 }
 0xc8b   :  { %v1648_v24 = vmul.f32 %v2248_v22, %v1632_v61  ;;  %2184 = vmatprep.subr.mxu0 %v1776_v32 }
 0xc8c   :  { %2185 = vmatpush3.msra.mxu0 %v1776_v32 }
 0xc8d   :  { %v1654_v11 = vmul.f32 %v1989_v23, %v1648_v24  ;;  %2186 = vmatprep.subr.mxu0 %v1774_v33 }
 0xc8e   :  { %v2250_v19 = vpop.eup %2249  ;;  %2187 = vmatpush3.msra.mxu0 %v1774_v33 }
 0xc8f   :  { %v1649_v21 = vmul.f32 %v2250_v19, %v1633_v60  ;;  %v1660_v27 = vadd.f32 %v1990_v25, %v1654_v11 }
 0xc91   :  { %v1655_v29 = vmul.f32 %v1989_v23, %v1649_v21  ;;  %2169 = vmatprep.mubr.msk.f32.mxu1 %vm75_vm0, %v1660_v27 }
 0xc93   :  { %v1661_v30 = vadd.f32 %v1990_v25, %v1655_v29 }
 0xc95   :  { %2170 = vmatmul.mubr.msk.f32.vlgmr.msra.gmra.mxu1 %vm75_vm0, %v1661_v30 }
 0xd55   :  { %v2171_v35 = vpop.f32.mrf.mxu1 }
 0xd56   :  { %v1748_v36 = vadd.f32 %v2171_v35, %v1991_v34 }
 0xd57   :  { %v1742_v38 = vpop.f32.mrf.mxu1 }
 0xd58   :  { %v1743_v40 = vadd.f32 %v1991_v34, %v1742_v38  ;;  %v1752_v43 = vmax.f32 %v1748_v36, 0.0 }
 0xd5a   :  { %v1751_v41 = vmax.f32 %v1743_v40, 0.0 }
 0xd5c   :  { %2188 = vmatprep.mubr.msk.f32.mxu0 %vm1797_vm5, %v1751_v41 }
 0xd5d   :  { %2189 = vmatmul.mubr.msk.f32.vlgmr.msra.gmra.mxu0 %vm1797_vm5, %v1752_v43 }
 0xe1d   :  { %v2190_v46 = vpop.f32.mrf.mxu0 }
 0xe1e   :  { %v1876_v47 = vadd.f32 %v2190_v46, %v1994_v45 }
 0xe1f   :  { %v1870_v48 = vpop.f32.mrf.mxu0 }
 0xe20   :  { %v1871_v49 = vadd.f32 %v1994_v45, %v1870_v48  ;;  %v1880_v50 = vadd.f32 %v1876_v47, %v1661_v30 }
 0xe22   :  { %v1884_v51 = vsel %vm75_vm0, %v1880_v50, 0.0  ;;  %v1879_v52 = vadd.f32 %v1871_v49, %v1660_v27 }
 0xe23   :  { %1885 = vadd.xlane.f32.xlu1 %v1884_v51 }
 0xe24   :  { %v1881_v53 = vsel %vm75_vm0, %v1879_v52, 0.0 }
 0xe25   :  { %1882 = vadd.xlane.f32.xlu0 %v1881_v53 }
 0xeac   :  { %v1886_v54 = vpop.xlane.xlu1 %1885 }
 0xead   :  { %v1888_v42 = vmul.f32 0.03125, %v1886_v54 }
 0xeae   :  { %v1883_v55 = vpop.xlane.xlu0 %1882 }
 0xeaf   :  { %v1887_v56 = vmul.f32 0.03125, %v1883_v55  ;;  %v1890_v37 = vsub.f32 %v1880_v50, %v1888_v42 }
 0xeb1   :  { %v1889_v57 = vsub.f32 %v1879_v52, %v1887_v56  ;;  %v1892_v58 = vmul.f32 %v1890_v37, %v1890_v37 }
 0xeb3   :  { %v1891_v44 = vmul.f32 %v1889_v57, %v1889_v57  ;;  %v1896_v59 = vsel %vm75_vm0, %v1892_v58, 0.0 }
 0xeb5   :  { %v1893_v39 = vsel %vm75_vm0, %v1891_v44, 0.0 }
 0xeb6   :  { %1894 = vadd.xlane.f32.xlu0 %v1893_v39 }
 0xeba   :  { %1897 = vadd.xlane.f32.xlu0 %v1896_v59 }
 0xebb   :  { %2326 = shalt.err (!%p2323_p5)
}
 0xebc   :  { %1948 = dma.vmem_to_hbm [thread:$0]  %s1943_s19, 256, %s2653_s4, [#allocation10], %s2367_s25, %s2367_s25, %s2368_s26   ;;  %v1997_v2 = vld [vmem:[#allocation7 + $0x6] ss:$0 sm:$0xff]  ;;  %v1998_v6 = vld [vmem:[#allocation7 + $0x7] ss:$0 sm:$0xff] }
 0xebd   :  { %s2386_s23 = smov [#allocation8]  }
 0xebe   :  { %s1930_s24 = sshll.u32 %s2386_s23, 4  ;;  %s1931_s24 = int_to_ptr.vmem [resolvable:$true] %s1930_s24 }
 0xebf   :  { %s2335_s4 = scalar_lea.vmem %s1931_s24, 256  ;;  %p2340_p7 = scmp.lt.s32.totalorder %s1931_s24, %s1931_s24 }
 0xec0   :  { %p2336_p6 = scmp.ne.s32.totalorder %s1931_s24, %s2335_s4  ;;  %p2341_p8 = scmp.lt.s32.totalorder %s2335_s4, %s2335_s4 }
 0xec2   :  { %p2342_p9 = por %p2341_p8, %p2340_p7 }
 0xec4   :  { %p2343_p10 = pnand %p2342_p9, %p2336_p6 }
 0xf3f   :  { %v1895_v60 = vpop.xlane.xlu0 %1894 }
 0xf40   :  { %v1899_v61 = vmul.f32 0.03125, %v1895_v60 }
 0xf42   :  { %v1901_v62 = vadd.f32 1e-05, %v1899_v61 }
 0xf43   :  { %v1898_v63 = vpop.xlane.xlu0 %1897 }
 0xf44   :  { %2251 = vrsqrt.f32 %v1901_v62  ;;  %v1900_v7 = vmul.f32 0.03125, %v1898_v63 }
 0xf46   :  { %v1902_v5 = vadd.f32 1e-05, %v1900_v7 }
 0xf48   :  { %2253 = vrsqrt.f32 %v1902_v5 }
 0xf51   :  { %v2252_v8 = vpop.eup %2251 }
 0xf52   :  { %v1905_v9 = vmul.f32 %v2252_v8, %v1889_v57 }
 0xf54   :  { %v1911_v12 = vmul.f32 %v1997_v2, %v1905_v9 }
 0xf55   :  { %v2254_v13 = vpop.eup %2253 }
 0xf56   :  { %v1906_v14 = vmul.f32 %v2254_v13, %v1890_v37  ;;  %v1917_v15 = vadd.f32 %v1998_v6, %v1911_v12 }
 0xf58   :  { %v1912_v16 = vmul.f32 %v1997_v2, %v1906_v14  ;;  %1919 = vst.msk [vmem:[#allocation8] sm:$0xff] %vm75_vm0, %v1917_v15 }
 0xf5a   :  { %v1918_v17 = vadd.f32 %v1998_v6, %v1912_v16 }
 0xf5c   :  { %1920 = vst.msk [vmem:[#allocation8 + $0x8] sm:$0xff] %vm75_vm0, %v1918_v17 }
 0xf5d   :  { %2346 = shalt.err (!%p2343_p10)
}
 0xf5e   :  { %1936 = dma.vmem_to_hbm [thread:$0]  %s1931_s24, 256, %s2652_s3, [#allocation4], %s2367_s25, %s2367_s25, %s2368_s26  }
 0xf5f   :  { %2359 = dma.done.wait [#allocation4], 256  }
 0xf60   :  { %2360 = vsyncadd [#allocation4], 4294967040 }
 0xf61   :  { %2361 = dma.done.wait [#allocation10], 256  }
 0xf62   :  { %2362 = vsyncadd [#allocation10], 4294967040 }
 0xf63   :  { %1955 = vsyncpa [#allocation3], 1 }
 0xf64   :  { %1956 = vsyncpa [#allocation6], 1 }
 0xf65   :  { %1957 = vsyncpa [#allocation4], 1 }
 0xf66   :  { %1958 = vsyncpa [#allocation10], 1 }

</bundles_post_ra>
